<compile_context>
chip_gen: v6e
topology: v6e:2x2x1
jax: 0.10.0
libtpu: 0.0.40
codegen_flags: <defaults>
</compile_context>

<pallas_src>
import jax
import jax.numpy as jnp
from jax import lax
from jax.experimental import pallas as pl
from jax.experimental.pallas import tpu as pltpu


def critic_kernel(s_ref, a_ref,
                  w1s_ref, w1a_ref, b1_ref,
                  w2_ref, b2_ref,
                  w3_ref, b3_ref,
                  w4_ref, b4_ref,
                  o_ref):
    # s_ref: (tile_b, state_dim), a_ref: (tile_b, action_dim)
    # Weights are (in, out); biases are (1, out) in f32. Accumulation is f32.
    cdt = w1s_ref.dtype  # MXU operand dtype (f32 or bf16)

    s = s_ref[...].astype(cdt)
    a = a_ref[...].astype(cdt)

    # Layer 1: fused concat -> split matmuls.
    h = (jnp.dot(s, w1s_ref[...], preferred_element_type=jnp.float32)
         + jnp.dot(a, w1a_ref[...], preferred_element_type=jnp.float32)
         + b1_ref[...])
    h = jnp.maximum(h, 0.0)

    # Layer 2.
    h = jnp.dot(h.astype(cdt), w2_ref[...],
                preferred_element_type=jnp.float32) + b2_ref[...]
    h = jnp.maximum(h, 0.0)

    # Layer 3.
    h = jnp.dot(h.astype(cdt), w3_ref[...],
                preferred_element_type=jnp.float32) + b3_ref[...]
    h = jnp.maximum(h, 0.0)

    # Layer 4: produce a lane-dense (1, tile_b) row directly
    # (contract w4's input dim against h's feature dim; no explicit transpose).
    out = lax.dot_general(
        w4_ref[...], h.astype(cdt),
        dimension_numbers=(((0,), (1,)), ((), ())),
        preferred_element_type=jnp.float32) + b4_ref[...]
    o_ref[...] = out.astype(o_ref.dtype)


def _round_up(x, m):
    return ((x + m - 1) // m) * m


def prepare_kernel_params(params, state_dim, action_dim, *,
                          pad_to=128, compute_dtype=jnp.float32):
    """Split W1 into state/action parts, zero-pad hidden width to a multiple of
    `pad_to` lanes, and cast matmul operands to compute_dtype (biases stay f32)."""
    w1, b1 = params["w1"], params["b1"]
    w2, b2 = params["w2"], params["b2"]
    w3, b3 = params["w3"], params["b3"]
    w4, b4 = params["w4"], params["b4"]

    mid = w1.shape[1]
    mid_pad = max(pad_to, _round_up(mid, pad_to))

    def pad_cols(w, n):
        return jnp.pad(w, ((0, 0), (0, n - w.shape[1])))

    def pad_rows(w, n):
        return jnp.pad(w, ((0, n - w.shape[0]), (0, 0)))

    w1s = w1[:state_dim]
    w1a = w1[state_dim:state_dim + action_dim]

    return {
        "w1s": pad_cols(w1s, mid_pad).astype(compute_dtype),
        "w1a": pad_cols(w1a, mid_pad).astype(compute_dtype),
        "b1":  pad_cols(b1, mid_pad).astype(jnp.float32),
        "w2":  pad_rows(pad_cols(w2, mid_pad), mid_pad).astype(compute_dtype),
        "b2":  pad_cols(b2, mid_pad).astype(jnp.float32),
        "w3":  pad_rows(pad_cols(w3, mid_pad), mid_pad).astype(compute_dtype),
        "b3":  pad_cols(b3, mid_pad).astype(jnp.float32),
        "w4":  pad_rows(w4, mid_pad).astype(compute_dtype),
        "b4":  b4.astype(jnp.float32),  # (1, 1)
    }


def critic_forward(state, action, params, *,
                   max_tile_b=512, pad_to=128, compute_dtype=jnp.float32):
    """Pallas implementation of Critic.forward.

    state:  (B, state_dim) float32
    action: (B, action_dim) float32
    returns (B, 1) float32
    """
    B, state_dim = state.shape
    action_dim = action.shape[1]

    kp = prepare_kernel_params(params, state_dim, action_dim,
                               pad_to=pad_to, compute_dtype=compute_dtype)
    mid_pad = kp["w2"].shape[0]

    # Batch tiling: large tiles, arbitrary B via zero padding.
    tile_b = min(max_tile_b, _round_up(B, 8))
    B_pad = _round_up(B, tile_b)
    num_tiles = B_pad // tile_b
    if B_pad != B:
        state = jnp.pad(state, ((0, B_pad - B), (0, 0)))
        action = jnp.pad(action, ((0, B_pad - B), (0, 0)))

    def _full(arr):
        nd = arr.ndim
        return pl.BlockSpec(arr.shape, lambda i, _nd=nd: (0,) * _nd)

    in_specs = [
        pl.BlockSpec((tile_b, state_dim), lambda i: (i, 0)),
        pl.BlockSpec((tile_b, action_dim), lambda i: (i, 0)),
        _full(kp["w1s"]), _full(kp["w1a"]), _full(kp["b1"]),
        _full(kp["w2"]), _full(kp["b2"]),
        _full(kp["w3"]), _full(kp["b3"]),
        _full(kp["w4"]), _full(kp["b4"]),
    ]
    # Lane-dense output: one (1, tile_b) row per grid step.
    out_spec = pl.BlockSpec((1, tile_b), lambda i: (i, 0))

    # Explicit VMEM budget: resident weights (assume 2 buffers each), double-buffered
    # input/output tiles, activation headroom. Capped below v7x's 64 MiB physical VMEM.
    weight_bytes = sum(int(v.size) * v.dtype.itemsize for v in kp.values())
    tile_bytes = (2 * tile_b * (state_dim + action_dim) * 4    # in tiles (double-buffered)
                  + 2 * tile_b * 4                             # out tile (double-buffered)
                  + 4 * tile_b * mid_pad * 4)                  # activation headroom
    vmem_limit = int(min(max(2 * weight_bytes + tile_bytes + (8 << 20), 32 << 20),
                         48 << 20))

    out = pl.pallas_call(
        critic_kernel,
        out_shape=jax.ShapeDtypeStruct((num_tiles, tile_b), jnp.float32),
        grid=(num_tiles,),
        in_specs=in_specs,
        out_specs=out_spec,
        compiler_params=pltpu.CompilerParams(
            dimension_semantics=("parallel",),
            vmem_limit_bytes=vmem_limit,
        ),
    )(state, action,
      kp["w1s"], kp["w1a"], kp["b1"],
      kp["w2"], kp["b2"],
      kp["w3"], kp["b3"],
      kp["w4"], kp["b4"])

    # (num_tiles, tile_b) -> (B, 1)
    return out.reshape(B_pad, 1)[:B]


def init_critic_params(key, state_dim, mid_dim, num_actions):
    """Synthetic init matching the nn.Linear shapes of Critic.__init__.

    PyTorch Linear i has weight (out, in), bias (out,). We store W transposed
    (in, out) and bias as (1, out) so the math is x @ W + b.
    """
    combined_dim = state_dim + num_actions
    dims = [(combined_dim, mid_dim), (mid_dim, mid_dim),
            (mid_dim, mid_dim), (mid_dim, 1)]
    params = {}
    for idx, (fan_in, fan_out) in enumerate(dims, start=1):
        key, kw, kb = jax.random.split(key, 3)
        bound = 1.0 / jnp.sqrt(fan_in)
        params[f"w{idx}"] = jax.random.uniform(
            kw, (fan_in, fan_out), jnp.float32, -bound, bound)
        params[f"b{idx}"] = jax.random.uniform(
            kb, (1, fan_out), jnp.float32, -bound, bound)
    return params


def critic_reference(state, action, params):
    x = jnp.concatenate([state, action], axis=-1)
    h = jnp.maximum(x @ params["w1"] + params["b1"], 0.0)
    h = jnp.maximum(h @ params["w2"] + params["b2"], 0.0)
    h = jnp.maximum(h @ params["w3"] + params["b3"], 0.0)
    return h @ params["w4"] + params["b4"]


if __name__ == "__main__":
    # Small shapes consistent with the module's forward.
    batch = 16
    state_dim = 12
    num_actions = 4
    mid_dim = 32

    key = jax.random.PRNGKey(0)
    key, ks, ka, kp = jax.random.split(key, 4)
    state = jax.random.normal(ks, (batch, state_dim), jnp.float32)
    action = jax.random.normal(ka, (batch, num_actions), jnp.float32)
    params = init_critic_params(kp, state_dim, mid_dim, num_actions)

    out = critic_forward(state, action, params)
    out = jax.block_until_ready(out)

    ref = critic_reference(state, action, params)
    assert out.shape == (batch, 1)
    assert jnp.allclose(out, ref, atol=1e-5, rtol=1e-5), "mismatch vs reference"

    print("KERNEL_OK")
</pallas_src>

<mosaic_0001>
module attributes {stable_mosaic.version = 11 : i64} {
  func.func @critic_kernel(%arg0: i32, %arg1: memref<16x12xf32, #tpu.memory_space<vmem>>, %arg2: memref<16x4xf32, #tpu.memory_space<vmem>>, %arg3: memref<12x128xf32, #tpu.memory_space<vmem>>, %arg4: memref<4x128xf32, #tpu.memory_space<vmem>>, %arg5: memref<1x128xf32, #tpu.memory_space<vmem>>, %arg6: memref<128x128xf32, #tpu.memory_space<vmem>>, %arg7: memref<1x128xf32, #tpu.memory_space<vmem>>, %arg8: memref<128x128xf32, #tpu.memory_space<vmem>>, %arg9: memref<1x128xf32, #tpu.memory_space<vmem>>, %arg10: memref<128x1xf32, #tpu.memory_space<vmem>>, %arg11: memref<1x1xf32, #tpu.memory_space<vmem>>, %arg12: memref<1x16xf32, #tpu.memory_space<vmem>>) attributes {dimension_semantics = [#tpu.dimension_semantics<parallel>], iteration_bounds = array<i64: 1>, scalar_prefetch = 0 : i64, scratch_operands = 0 : i64, tpu.core_type = #tpu.core_type<tc>, window_params = [{transform_indices = @transform_0, window_bounds = array<i64: 16, 12>}, {transform_indices = @transform_1, window_bounds = array<i64: 16, 4>}, {pipeline_mode = #tpu.pipeline_mode<synchronous>, transform_indices = @transform_2, window_bounds = array<i64: 12, 128>}, {pipeline_mode = #tpu.pipeline_mode<synchronous>, transform_indices = @transform_3, window_bounds = array<i64: 4, 128>}, {pipeline_mode = #tpu.pipeline_mode<synchronous>, transform_indices = @transform_4, window_bounds = array<i64: 1, 128>}, {pipeline_mode = #tpu.pipeline_mode<synchronous>, transform_indices = @transform_5, window_bounds = array<i64: 128, 128>}, {pipeline_mode = #tpu.pipeline_mode<synchronous>, transform_indices = @transform_6, window_bounds = array<i64: 1, 128>}, {pipeline_mode = #tpu.pipeline_mode<synchronous>, transform_indices = @transform_7, window_bounds = array<i64: 128, 128>}, {pipeline_mode = #tpu.pipeline_mode<synchronous>, transform_indices = @transform_8, window_bounds = array<i64: 1, 128>}, {pipeline_mode = #tpu.pipeline_mode<synchronous>, transform_indices = @transform_9, window_bounds = array<i64: 128, 1>}, {pipeline_mode = #tpu.pipeline_mode<synchronous>, transform_indices = @transform_10, window_bounds = array<i64: 1, 1>}, {transform_indices = @transform_11, window_bounds = array<i64: 1, 16>}]} {
    %c0 = arith.constant 0 : index
    %c0_0 = arith.constant 0 : index
    %0 = vector.load %arg1[%c0, %c0_0] : memref<16x12xf32, #tpu.memory_space<vmem>>, vector<16x12xf32>
    %c0_1 = arith.constant 0 : index
    %c0_2 = arith.constant 0 : index
    %1 = vector.load %arg2[%c0_1, %c0_2] : memref<16x4xf32, #tpu.memory_space<vmem>>, vector<16x4xf32>
    %c0_3 = arith.constant 0 : index
    %c0_4 = arith.constant 0 : index
    %2 = vector.load %arg3[%c0_3, %c0_4] : memref<12x128xf32, #tpu.memory_space<vmem>>, vector<12x128xf32>
    %cst = arith.constant dense<0.000000e+00> : vector<16x128xf32>
    %3 = tpu.matmul %0, %2, %cst {dimension_numbers = #tpu.dot_dimension_numbers<[1], [0], [0], [1], [0, 0, 1, 1], [], []>} : vector<16x12xf32>, vector<12x128xf32>, vector<16x128xf32> -> vector<16x128xf32>
    %c0_5 = arith.constant 0 : index
    %c0_6 = arith.constant 0 : index
    %4 = vector.load %arg4[%c0_5, %c0_6] : memref<4x128xf32, #tpu.memory_space<vmem>>, vector<4x128xf32>
    %cst_7 = arith.constant dense<0.000000e+00> : vector<16x128xf32>
    %5 = tpu.matmul %1, %4, %cst_7 {dimension_numbers = #tpu.dot_dimension_numbers<[1], [0], [0], [1], [0, 0, 1, 1], [], []>} : vector<16x4xf32>, vector<4x128xf32>, vector<16x128xf32> -> vector<16x128xf32>
    %6 = arith.addf %3, %5 : vector<16x128xf32>
    %c0_8 = arith.constant 0 : index
    %c0_9 = arith.constant 0 : index
    %7 = vector.load %arg5[%c0_8, %c0_9] : memref<1x128xf32, #tpu.memory_space<vmem>>, vector<1x128xf32>
    %8 = vector.broadcast %7 : vector<1x128xf32> to vector<16x128xf32>
    %9 = arith.addf %6, %8 : vector<16x128xf32>
    %cst_10 = arith.constant 0.000000e+00 : f32
    %10 = vector.broadcast %cst_10 : f32 to vector<16x128xf32>
    %11 = arith.maximumf %9, %10 : vector<16x128xf32>
    %c0_11 = arith.constant 0 : index
    %c0_12 = arith.constant 0 : index
    %12 = vector.load %arg6[%c0_11, %c0_12] : memref<128x128xf32, #tpu.memory_space<vmem>>, vector<128x128xf32>
    %cst_13 = arith.constant dense<0.000000e+00> : vector<16x128xf32>
    %13 = tpu.matmul %11, %12, %cst_13 {dimension_numbers = #tpu.dot_dimension_numbers<[1], [0], [0], [1], [0, 0, 1, 1], [], []>} : vector<16x128xf32>, vector<128x128xf32>, vector<16x128xf32> -> vector<16x128xf32>
    %c0_14 = arith.constant 0 : index
    %c0_15 = arith.constant 0 : index
    %14 = vector.load %arg7[%c0_14, %c0_15] : memref<1x128xf32, #tpu.memory_space<vmem>>, vector<1x128xf32>
    %15 = vector.broadcast %14 : vector<1x128xf32> to vector<16x128xf32>
    %16 = arith.addf %13, %15 : vector<16x128xf32>
    %cst_16 = arith.constant 0.000000e+00 : f32
    %17 = vector.broadcast %cst_16 : f32 to vector<16x128xf32>
    %18 = arith.maximumf %16, %17 : vector<16x128xf32>
    %c0_17 = arith.constant 0 : index
    %c0_18 = arith.constant 0 : index
    %19 = vector.load %arg8[%c0_17, %c0_18] : memref<128x128xf32, #tpu.memory_space<vmem>>, vector<128x128xf32>
    %cst_19 = arith.constant dense<0.000000e+00> : vector<16x128xf32>
    %20 = tpu.matmul %18, %19, %cst_19 {dimension_numbers = #tpu.dot_dimension_numbers<[1], [0], [0], [1], [0, 0, 1, 1], [], []>} : vector<16x128xf32>, vector<128x128xf32>, vector<16x128xf32> -> vector<16x128xf32>
    %c0_20 = arith.constant 0 : index
    %c0_21 = arith.constant 0 : index
    %21 = vector.load %arg9[%c0_20, %c0_21] : memref<1x128xf32, #tpu.memory_space<vmem>>, vector<1x128xf32>
    %22 = vector.broadcast %21 : vector<1x128xf32> to vector<16x128xf32>
    %23 = arith.addf %20, %22 : vector<16x128xf32>
    %cst_22 = arith.constant 0.000000e+00 : f32
    %24 = vector.broadcast %cst_22 : f32 to vector<16x128xf32>
    %25 = arith.maximumf %23, %24 : vector<16x128xf32>
    %c0_23 = arith.constant 0 : index
    %c0_24 = arith.constant 0 : index
    %26 = vector.load %arg10[%c0_23, %c0_24] : memref<128x1xf32, #tpu.memory_space<vmem>>, vector<128x1xf32>
    %cst_25 = arith.constant dense<0.000000e+00> : vector<1x16xf32>
    %27 = tpu.matmul %26, %25, %cst_25 {dimension_numbers = #tpu.dot_dimension_numbers<[0], [1], [1], [0], [0, 1, 1, 0], [], []>} : vector<128x1xf32>, vector<16x128xf32>, vector<1x16xf32> -> vector<1x16xf32>
    %c0_26 = arith.constant 0 : index
    %c0_27 = arith.constant 0 : index
    %28 = vector.load %arg11[%c0_26, %c0_27] : memref<1x1xf32, #tpu.memory_space<vmem>>, vector<1x1xf32>
    %29 = vector.broadcast %28 : vector<1x1xf32> to vector<1x16xf32>
    %30 = arith.addf %27, %29 : vector<1x16xf32>
    %c0_28 = arith.constant 0 : index
    %c0_29 = arith.constant 0 : index
    %31 = vector.load %arg12[%c0_28, %c0_29] : memref<1x16xf32, #tpu.memory_space<vmem>>, vector<1x16xf32>
    tpu.vector_store %arg12[%c0_28, %c0_29], %30 {strides = array<i32>} : memref<1x16xf32, #tpu.memory_space<vmem>>, vector<1x16xf32>,
    return
  }
  func.func @transform_0(%arg0: i32) -> (i32, i32) {
    %c0_i32 = arith.constant 0 : i32
    %c0_i32_0 = arith.constant 0 : i32
    return %arg0, %c0_i32 : i32, i32
  }
  func.func @transform_1(%arg0: i32) -> (i32, i32) {
    %c0_i32 = arith.constant 0 : i32
    %c0_i32_0 = arith.constant 0 : i32
    return %arg0, %c0_i32 : i32, i32
  }
  func.func @transform_2(%arg0: i32) -> (i32, i32) {
    %c0_i32 = arith.constant 0 : i32
    %c0_i32_0 = arith.constant 0 : i32
    %c0_i32_1 = arith.constant 0 : i32
    return %c0_i32, %c0_i32_0 : i32, i32
  }
  func.func @transform_3(%arg0: i32) -> (i32, i32) {
    %c0_i32 = arith.constant 0 : i32
    %c0_i32_0 = arith.constant 0 : i32
    %c0_i32_1 = arith.constant 0 : i32
    return %c0_i32, %c0_i32_0 : i32, i32
  }
  func.func @transform_4(%arg0: i32) -> (i32, i32) {
    %c0_i32 = arith.constant 0 : i32
    %c0_i32_0 = arith.constant 0 : i32
    %c0_i32_1 = arith.constant 0 : i32
    return %c0_i32, %c0_i32_0 : i32, i32
  }
  func.func @transform_5(%arg0: i32) -> (i32, i32) {
    %c0_i32 = arith.constant 0 : i32
    %c0_i32_0 = arith.constant 0 : i32
    %c0_i32_1 = arith.constant 0 : i32
    return %c0_i32, %c0_i32_0 : i32, i32
  }
  func.func @transform_6(%arg0: i32) -> (i32, i32) {
    %c0_i32 = arith.constant 0 : i32
    %c0_i32_0 = arith.constant 0 : i32
    %c0_i32_1 = arith.constant 0 : i32
    return %c0_i32, %c0_i32_0 : i32, i32
  }
  func.func @transform_7(%arg0: i32) -> (i32, i32) {
    %c0_i32 = arith.constant 0 : i32
    %c0_i32_0 = arith.constant 0 : i32
    %c0_i32_1 = arith.constant 0 : i32
    return %c0_i32, %c0_i32_0 : i32, i32
  }
  func.func @transform_8(%arg0: i32) -> (i32, i32) {
    %c0_i32 = arith.constant 0 : i32
    %c0_i32_0 = arith.constant 0 : i32
    %c0_i32_1 = arith.constant 0 : i32
    return %c0_i32, %c0_i32_0 : i32, i32
  }
  func.func @transform_9(%arg0: i32) -> (i32, i32) {
    %c0_i32 = arith.constant 0 : i32
    %c0_i32_0 = arith.constant 0 : i32
    %c0_i32_1 = arith.constant 0 : i32
    return %c0_i32, %c0_i32_0 : i32, i32
  }
  func.func @transform_10(%arg0: i32) -> (i32, i32) {
    %c0_i32 = arith.constant 0 : i32
    %c0_i32_0 = arith.constant 0 : i32
    %c0_i32_1 = arith.constant 0 : i32
    return %c0_i32, %c0_i32_0 : i32, i32
  }
  func.func @transform_11(%arg0: i32) -> (i32, i32) {
    %c0_i32 = arith.constant 0 : i32
    %c0_i32_0 = arith.constant 0 : i32
    return %arg0, %c0_i32 : i32, i32
  }
}

</mosaic_0001>

<bundles_post_ra>
// kernel: tpu_custom_call.1
= control target key start
LH: loop header
LB: loop body
LE: loop exit
PB: predicated region body
PF: predicated region fallthrough
CT: control target
= control target key end

     0   :  { %s1058_s0 = inlined_call_operand.vmem [shape: f32[16,12], index: 0, kind: input, shape index: {}]   ;;  %s1059_s1 = inlined_call_operand.vmem [shape: f32[16,4], index: 1, kind: input, shape index: {}]   ;;  %s1060_s2 = inlined_call_operand.vmem [shape: f32[12,128], index: 2, kind: input, shape index: {}]   ;;  %s1061_s3 = inlined_call_operand.hbm [shape: f32[4,128], index: 3, kind: input, shape index: {}]   ;;  %s1062_s4 = inlined_call_operand.hbm [shape: f32[1,128], index: 4, kind: input, shape index: {}]   ;;  %s1063_s5 = inlined_call_operand.vmem [shape: f32[128,128], index: 5, kind: input, shape index: {}]   ;;  %s1064_s6 = inlined_call_operand.vmem [shape: f32[1,128], index: 6, kind: input, shape index: {}]   ;;  %s1065_s7 = inlined_call_operand.hbm [shape: f32[128,128], index: 7, kind: input, shape index: {}]   ;;  %s1066_s8 = inlined_call_operand.vmem [shape: f32[1,128], index: 8, kind: input, shape index: {}]   ;;  %s1067_s9 = inlined_call_operand.vmem [shape: f32[128,1], index: 9, kind: input, shape index: {}]   ;;  %s1068_s10 = inlined_call_operand.<no memory space> [shape: f32[1,1], index: 10, kind: input, shape index: {}]   ;;  %s1069_s11 = inlined_call_operand.hbm [shape: f32[1,16], index: 11, kind: output, shape index: {}]  }
   0x1   :  { %v16_v0 = vstv %s1068_s10 }
   0x2   :  { %17 = vst [vmem:[#allocation2] sm:$0x1] %v16_v0 }
   0x3   :  { %18 = vsyncpa [#allocation4], 0 }
   0x4   :  { %19 = vsyncpa [#allocation7], 0 }
   0x5   :  { %20 = vsyncpa [#allocation5], 0  ;;  %s854_s19 = smov [#allocation6]   ;;  %s855_s21 = smov [#allocation3]  }
   0x6   :  { %s43_s20 = sshll.u32 %s854_s19, 4  ;;  %s33_s22 = sshll.u32 %s855_s21, 4  ;;  %s44_s20 = int_to_ptr.vmem [resolvable:$true] %s43_s20  ;;  %s34_s22 = int_to_ptr.vmem [resolvable:$true] %s33_s22 }
   0x7   :  { %s776_s23 = scalar_lea.vmem %s44_s20, 16  ;;  %s780_s24 = scalar_lea.vmem %s44_s20, 32 }
   0x8   :  { %p777_p0 = scmp.ne.s32.totalorder %s44_s20, %s776_s23  ;;  %p781_p1 = scmp.lt.s32.totalorder %s44_s20, %s44_s20 }
   0x9   :  { %p782_p2 = scmp.lt.s32.totalorder %s780_s24, %s776_s23 }
   0xb   :  { %p783_p3 = por %p782_p2, %p781_p1 }
   0xd   :  { %p784_p4 = pnand %p783_p3, %p777_p0 }
   0xf   :  { %787 = shalt.err (!%p784_p4)
}
  0x10   :  { %46 = dma.hbm_to_vmem [thread:$0]  %s1062_s4, 16, %s44_s20, [#allocation7]  }
  0x11   :  { %s796_s26 = scalar_lea.vmem %s34_s22, 64  ;;  %p801_p6 = scmp.lt.s32.totalorder %s34_s22, %s34_s22 }
  0x12   :  { %p797_p5 = scmp.ne.s32.totalorder %s34_s22, %s796_s26  ;;  %p802_p7 = scmp.lt.s32.totalorder %s796_s26, %s796_s26 }
  0x14   :  { %p803_p8 = por %p802_p7, %p801_p6 }
  0x16   :  { %p804_p9 = pnand %p803_p8, %p797_p5 }
  0x18   :  { %807 = shalt.err (!%p804_p9)
}
  0x19   :  { %36 = dma.hbm_to_vmem [thread:$0]  %s1061_s3, 64, %s34_s22, [#allocation4]  }
  0x1a   :  { %s856_s29 = smov [#allocation8]  }
  0x1b   :  { %s56_s30 = sshll.u32 %s856_s29, 4  ;;  %s57_s30 = int_to_ptr.vmem [resolvable:$true] %s56_s30 }
  0x1c   :  { %s816_s12 = scalar_lea.vmem %s57_s30, 2048  ;;  %p821_p11 = scmp.lt.s32.totalorder %s57_s30, %s57_s30 }
  0x1d   :  { %p817_p10 = scmp.ne.s32.totalorder %s57_s30, %s816_s12  ;;  %p822_p12 = scmp.lt.s32.totalorder %s816_s12, %s816_s12 }
  0x1f   :  { %p823_p13 = por %p822_p12, %p821_p11 }
  0x21   :  { %p824_p0 = pnand %p823_p13, %p817_p10 }
  0x23   :  { %827 = shalt.err (!%p824_p0)
}
  0x24   :  { %s857_s4 = smov 128   ;;  %s858_s13 = smov 8  }
  0x25   :  { %62 = dma.hbm_to_vmem [thread:$0]  %s1065_s7, 2048, %s57_s30, [#allocation7], %s857_s4, %s857_s4, %s858_s13  }
  0x26   :  { %848 = dma.done.wait [#allocation4], 64  }
  0x27   :  { %849 = vsyncadd [#allocation4], 4294967232 }
  0x28   :  { %850 = dma.done.wait [#allocation7], 2064  }
  0x29   :  { %851 = vsyncadd [#allocation7], 4294965232  ;;  %vm92_vm0 = vcmask 1043456   ;;  %vm85_vm1 = vcmask 31744   ;;  %v84_v1 = vld [vmem:[#allocation3] sm:$0xf] }
  0x2a   :  { %v80_v2 = vld [vmem:[%s1059_s1] sm:$0xff]  ;;  %v81_v3 = vld [vmem:[%s1059_s1 + $0x8] sm:$0xff]  ;;  %668 = vmatprep.subr.msk.mxu1 %vm92_vm0, %v84_v1  ;;  %vm171_vm2 = vcmask 97280   ;;  %v282_v7 = vld [vmem:[%s1063_s5 + $0x78] sm:$0xff]  ;;  %vm860_vm3 = vmmov 0   ;;  %vm595_vm4 = vcmask 122880  }
  0x2b   :  { %670 = vmatprep.mubr.msk.f32.mxu1 %vm85_vm1, %v80_v2  ;;  %v83_v4 = vld [vmem:[%s1060_s2 + $0x8] sm:$0xf]  ;;  %v78_v5 = vld [vmem:[%s1058_s0] sm:$0xff]  ;;  %669 = vmatpush3.msk.msra.mxu1 %vm92_vm0, %v84_v1  ;;  %v281_v9 = vld [vmem:[%s1063_s5 + $0x70] sm:$0xff] }
  0x2c   :  { %v82_v6 = vld [vmem:[%s1060_s2] sm:$0xff]  ;;  %671 = vmatmul.mubr.msk.f32.vlgmr.msra.gmra.mxu1 %vm85_vm1, %v81_v3  ;;  %673 = vmatprep.subr.msk.mxu1 %vm92_vm0, %v83_v4  ;;  %v79_v8 = vld [vmem:[%s1058_s0 + $0x8] sm:$0xff]  ;;  %v278_v12 = vld [vmem:[%s1063_s5 + $0x58] sm:$0xff] }
  0x2d   :  { %674 = vmatpush3.msk.msra.mxu1 %vm92_vm0, %v83_v4  ;;  %677 = vmatprep.mubr.msk.f32.mxu1 %vm171_vm2, %v78_v5  ;;  %v280_v10 = vld [vmem:[%s1063_s5 + $0x68] sm:$0xff]  ;;  %v279_v11 = vld [vmem:[%s1063_s5 + $0x60] sm:$0xff]  ;;  %v277_v13 = vld [vmem:[%s1063_s5 + $0x50] sm:$0xff] }
  0x2e   :  { %675 = vmatprep.subr.mxu1 %v82_v6  ;;  %680 = vmatprep.subr.mxu0 %v282_v7  ;;  %v276_v14 = vld [vmem:[%s1063_s5 + $0x48] sm:$0xff]  ;;  %v275_v15 = vld [vmem:[%s1063_s5 + $0x40] sm:$0xff]  ;;  %v274_v16 = vld [vmem:[%s1063_s5 + $0x38] sm:$0xff] }
  0x2f   :  { %676 = vmatpush3.msra.mxu1 %v82_v6  ;;  %681 = vmatpush3.msra.mxu0 %v282_v7  ;;  %v273_v17 = vld [vmem:[%s1063_s5 + $0x30] sm:$0xff]  ;;  %v272_v18 = vld [vmem:[%s1063_s5 + $0x28] sm:$0xff]  ;;  %v271_v19 = vld [vmem:[%s1063_s5 + $0x20] sm:$0xff] }
  0x30   :  { %678 = vmatmul.mubr.msk.f32.vlgmr.msra.gmra.mxu1 %vm171_vm2, %v79_v8  ;;  %682 = vmatprep.subr.mxu0 %v281_v9  ;;  %v270_v20 = vld [vmem:[%s1063_s5 + $0x18] sm:$0xff]  ;;  %v269_v21 = vld [vmem:[%s1063_s5 + $0x10] sm:$0xff]  ;;  %v268_v22 = vld [vmem:[%s1063_s5 + $0x8] sm:$0xff] }
  0x31   :  { %683 = vmatpush3.msra.mxu0 %v281_v9  ;;  %v267_v23 = vld [vmem:[%s1063_s5] sm:$0xff]  ;;  %v381_v25 = vld [vmem:[#allocation8 + $0x70] sm:$0xff]  ;;  %v380_v26 = vld [vmem:[#allocation8 + $0x68] sm:$0xff] }
  0x32   :  { %684 = vmatprep.subr.mxu0 %v280_v10  ;;  %v382_v24 = vld [vmem:[#allocation8 + $0x78] sm:$0xff]  ;;  %v379_v27 = vld [vmem:[#allocation8 + $0x60] sm:$0xff]  ;;  %v377_v29 = vld [vmem:[#allocation8 + $0x50] sm:$0xff] }
  0x33   :  { %685 = vmatpush3.msra.mxu0 %v280_v10  ;;  %715 = vmatprep.subr.mxu1 %v382_v24  ;;  %v378_v28 = vld [vmem:[#allocation8 + $0x58] sm:$0xff]  ;;  %v376_v30 = vld [vmem:[#allocation8 + $0x48] sm:$0xff]  ;;  %v375_v31 = vld [vmem:[#allocation8 + $0x40] sm:$0xff]  ;;  %v859_v10 = vmov 0.0  }
  0x34   :  { %686 = vmatprep.subr.mxu0 %v279_v11  ;;  %716 = vmatpush3.msra.mxu1 %v382_v24  ;;  %v374_v32 = vld [vmem:[#allocation8 + $0x38] sm:$0xff]  ;;  %v373_v33 = vld [vmem:[#allocation8 + $0x30] sm:$0xff]  ;;  %v372_v34 = vld [vmem:[#allocation8 + $0x28] sm:$0xff] }
  0x35   :  { %687 = vmatpush3.msra.mxu0 %v279_v11  ;;  %717 = vmatprep.subr.mxu1 %v381_v25  ;;  %v371_v35 = vld [vmem:[#allocation8 + $0x20] sm:$0xff]  ;;  %v619_v40 = vld [vmem:[#allocation6] ss:$0 sm:$0xff]  ;;  %v369_v48 = vld [vmem:[#allocation8 + $0x10] sm:$0xff] }
  0x36   :  { %688 = vmatprep.subr.mxu0 %v278_v12  ;;  %718 = vmatpush3.msra.mxu1 %v381_v25  ;;  %v370_v47 = vld [vmem:[#allocation8 + $0x18] sm:$0xff]  ;;  %v368_v49 = vld [vmem:[#allocation8 + $0x8] sm:$0xff]  ;;  %v367_v50 = vld [vmem:[#allocation8] sm:$0xff] }
  0x37   :  { %689 = vmatpush3.msra.mxu0 %v278_v12  ;;  %719 = vmatprep.subr.mxu1 %v380_v26  ;;  %v467_v51 = vld [vmem:[%s1067_s9] sm:$0xff]  ;;  %v468_v52 = vld [vmem:[%s1067_s9 + $0x8] sm:$0xff]  ;;  %v469_v53 = vld [vmem:[%s1067_s9 + $0x10] sm:$0xff]  ;;  %v861_v12 = vmov 0  }
  0x38   :  { %690 = vmatprep.subr.mxu0 %v277_v13  ;;  %720 = vmatpush3.msra.mxu1 %v380_v26  ;;  %v470_v54 = vld [vmem:[%s1067_s9 + $0x18] sm:$0xff]  ;;  %v471_v55 = vld [vmem:[%s1067_s9 + $0x20] sm:$0xff]  ;;  %v472_v56 = vld [vmem:[%s1067_s9 + $0x28] sm:$0xff] }
  0x39   :  { %691 = vmatpush3.msra.mxu0 %v277_v13  ;;  %721 = vmatprep.subr.mxu1 %v379_v27  ;;  %v473_v57 = vld [vmem:[%s1067_s9 + $0x30] sm:$0xff]  ;;  %v474_v58 = vld [vmem:[%s1067_s9 + $0x38] sm:$0xff]  ;;  %v475_v59 = vld [vmem:[%s1067_s9 + $0x40] sm:$0xff] }
  0x3a   :  { %692 = vmatprep.subr.mxu0 %v276_v14  ;;  %722 = vmatpush3.msra.mxu1 %v379_v27  ;;  %v476_v60 = vld [vmem:[%s1067_s9 + $0x48] sm:$0xff]  ;;  %v477_v61 = vld [vmem:[%s1067_s9 + $0x50] sm:$0xff]  ;;  %v478_v62 = vld [vmem:[%s1067_s9 + $0x58] sm:$0xff] }
  0x3b   :  { %693 = vmatpush3.msra.mxu0 %v276_v14  ;;  %723 = vmatprep.subr.mxu1 %v378_v28  ;;  %v479_v63 = vld [vmem:[%s1067_s9 + $0x60] sm:$0xff]  ;;  %v480_v0 = vld [vmem:[%s1067_s9 + $0x68] sm:$0xff]  ;;  %v481_v1 = vld [vmem:[%s1067_s9 + $0x70] sm:$0xff] }
  0x3c   :  { %694 = vmatprep.subr.mxu0 %v275_v15  ;;  %724 = vmatpush3.msra.mxu1 %v378_v28  ;;  %v482_v2 = vld [vmem:[%s1067_s9 + $0x78] sm:$0xff]  ;;  %v620_v3 = vld [vmem:[%s1064_s6] ss:$0 sm:$0xff]  ;;  %s862_s6 = smov [#allocation9]  }
  0x3d   :  { %695 = vmatpush3.msra.mxu0 %v275_v15  ;;  %725 = vmatprep.subr.mxu1 %v377_v29  ;;  %v483_v11 = vld [vmem:[#allocation2] sm:$0x1]  ;;  %s603_s15 = sshll.u32 %s862_s6, 4  ;;  %s604_s15 = int_to_ptr.vmem [resolvable:$true] %s603_s15 }
  0x3e   :  { %696 = vmatprep.subr.mxu0 %v274_v16  ;;  %726 = vmatpush3.msra.mxu1 %v377_v29  ;;  %v621_v13 = vld [vmem:[%s1066_s8] ss:$0 sm:$0xff]  ;;  %s828_s8 = scalar_lea.vmem %s604_s15, 16  ;;  %s832_s3 = scalar_lea.vmem %s604_s15, 32 }
  0x3f   :  { %697 = vmatpush3.msra.mxu0 %v274_v16  ;;  %727 = vmatprep.subr.mxu1 %v376_v30  ;;  %p829_p1 = scmp.ne.s32.totalorder %s604_s15, %s828_s8  ;;  %p833_p2 = scmp.lt.s32.totalorder %s604_s15, %s604_s15 }
  0x40   :  { %698 = vmatprep.subr.mxu0 %v273_v17  ;;  %728 = vmatpush3.msra.mxu1 %v376_v30  ;;  %p834_p3 = scmp.lt.s32.totalorder %s832_s3, %s828_s8 }
  0x41   :  { %699 = vmatpush3.msra.mxu0 %v273_v17  ;;  %729 = vmatprep.subr.mxu1 %v375_v31 }
  0x42   :  { %700 = vmatprep.subr.mxu0 %v272_v18  ;;  %730 = vmatpush3.msra.mxu1 %v375_v31  ;;  %p835_p4 = por %p834_p3, %p833_p2 }
  0x43   :  { %701 = vmatpush3.msra.mxu0 %v272_v18  ;;  %731 = vmatprep.subr.mxu1 %v374_v32 }
  0x44   :  { %702 = vmatprep.subr.mxu0 %v271_v19  ;;  %732 = vmatpush3.msra.mxu1 %v374_v32  ;;  %p836_p5 = pnand %p835_p4, %p829_p1 }
  0x45   :  { %703 = vmatpush3.msra.mxu0 %v271_v19  ;;  %733 = vmatprep.subr.mxu1 %v373_v33 }
  0x46   :  { %704 = vmatprep.subr.mxu0 %v270_v20  ;;  %734 = vmatpush3.msra.mxu1 %v373_v33 }
  0x47   :  { %705 = vmatpush3.msra.mxu0 %v270_v20  ;;  %735 = vmatprep.subr.mxu1 %v372_v34 }
  0x48   :  { %706 = vmatprep.subr.mxu0 %v269_v21  ;;  %736 = vmatpush3.msra.mxu1 %v372_v34 }
  0x49   :  { %707 = vmatpush3.msra.mxu0 %v269_v21  ;;  %737 = vmatprep.subr.mxu1 %v371_v35  ;;  %v489_v21 = vlaneseq }
  0x4a   :  { %708 = vmatprep.subr.mxu0 %v268_v22  ;;  %738 = vmatpush3.msra.mxu1 %v371_v35 }
  0x4b   :  { %709 = vmatpush3.msra.mxu0 %v268_v22  ;;  %739 = vmatprep.subr.mxu1 %v370_v47  ;;  %v490_v22 = vshrl.u32 %v489_v21, 7 }
  0x4c   :  { %710 = vmatprep.subr.mxu0 %v267_v23  ;;  %740 = vmatpush3.msra.mxu1 %v370_v47 }
  0x4d   :  { %711 = vmatpush3.msra.mxu0 %v267_v23  ;;  %741 = vmatprep.subr.mxu1 %v369_v48  ;;  %v491_v23 = vsub.s32 0, %v490_v22 }
  0x4e   :  { %742 = vmatpush3.msra.mxu1 %v369_v48  ;;  %493 = vxpose.xlu0.b32.start [1/16] (narrow) %v467_v51, 8 }
  0x4f   :  { %743 = vmatprep.subr.mxu1 %v368_v49  ;;  %750 = vmatprep.subr.mxu0 %v859_v10 }
  0x50   :  { %744 = vmatpush3.msra.mxu1 %v368_v49  ;;  %766 = vset.pattern.permute.xlu1 %v861_v12 }
  0x51   :  { %745 = vmatprep.subr.mxu1 %v367_v50  ;;  %486 = vperm.xlu1 %766, %v483_v11  }
  0x52   :  { %746 = vmatpush3.msra.mxu1 %v367_v50  ;;  %494 = vxpose.xlu0.b32.cont [2/16] (narrow) %v468_v52, 8 }
  0x56   :  { %495 = vxpose.xlu0.b32.cont [3/16] (narrow) %v469_v53, 8 }
  0x5a   :  { %496 = vxpose.xlu0.b32.cont [4/16] (narrow) %v470_v54, 8 }
  0x5e   :  { %497 = vxpose.xlu0.b32.cont [5/16] (narrow) %v471_v55, 8 }
  0x62   :  { %498 = vxpose.xlu0.b32.cont [6/16] (narrow) %v472_v56, 8 }
  0x66   :  { %499 = vxpose.xlu0.b32.cont [7/16] (narrow) %v473_v57, 8 }
  0x6a   :  { %500 = vxpose.xlu0.b32.cont [8/16] (narrow) %v474_v58, 8 }
  0x6e   :  { %501 = vxpose.xlu0.b32.cont [9/16] (narrow) %v475_v59, 8 }
  0x72   :  { %502 = vxpose.xlu0.b32.cont [10/16] (narrow) %v476_v60, 8 }
  0x76   :  { %503 = vxpose.xlu0.b32.cont [11/16] (narrow) %v477_v61, 8 }
  0x7a   :  { %504 = vxpose.xlu0.b32.cont [12/16] (narrow) %v478_v62, 8 }
  0x7e   :  { %505 = vxpose.xlu0.b32.cont [13/16] (narrow) %v479_v63, 8 }
  0x82   :  { %506 = vxpose.xlu0.b32.cont [14/16] (narrow) %v480_v0, 8 }
  0x86   :  { %507 = vxpose.xlu0.b32.cont [15/16] (narrow) %v481_v1, 8 }
  0x8a   :  { %508 = vxpose.xlu0.b32.end [16/16] (narrow) %v482_v2, 8 }
  0xb3   :  { %767 = vset.pattern.permute.xlu0 %v861_v12 }
  0xca   :  { %v509_v20 = vpop.trf.xlu0 }
  0xcc   :  { %v487_v24 = vpop.permute.xlu1 %486 }
  0xcd   :  { %v492_v25 = vrot.slane %v487_v24, %v491_v23 }
  0xec   :  { %v672_v36 = vpop.f32.mrf.mxu1 }
  0xee   :  { %v162_v37 = vpop.f32.mrf.mxu1 }
  0xf0   :  { %v679_v38 = vpop.f32.mrf.mxu1 }
  0xf1   :  { %v253_v39 = vadd.f32 %v679_v38, %v672_v36 }
  0xf2   :  { %v247_v41 = vpop.f32.mrf.mxu1 }
  0xf3   :  { %v248_v42 = vadd.f32 %v247_v41, %v162_v37  ;;  %v264_v43 = vadd.f32 %v619_v40, %v253_v39 }
  0xf5   :  { %v263_v44 = vadd.f32 %v619_v40, %v248_v42  ;;  %v266_v46 = vmax.f32 %v264_v43, 0.0 }
  0xf7   :  { %v265_v45 = vmax.f32 %v263_v44, 0.0 }
  0xf9   :  { %712 = vmatprep.mubr.f32.mxu0 %v265_v45 }
  0xfa   :  { %713 = vmatmul.mubr.f32.vlgmr.msra.gmra.mxu0 %v266_v46 }
  0xfb   :  { %754 = vmatprep.mubr.msk.f32.mxu0 %vm860_vm3, %v859_v10 }
 0x1ba   :  { %v714_v4 = vpop.f32.mrf.mxu0 }
 0x1bb   :  { %v362_v5 = vadd.f32 %v714_v4, %v620_v3 }
 0x1bc   :  { %v356_v6 = vpop.f32.mrf.mxu0 }
 0x1bd   :  { %v357_v7 = vadd.f32 %v620_v3, %v356_v6  ;;  %v366_v9 = vmax.f32 %v362_v5, 0.0 }
 0x1bf   :  { %v365_v8 = vmax.f32 %v357_v7, 0.0 }
 0x1c1   :  { %747 = vmatprep.mubr.f32.mxu1 %v365_v8 }
 0x1c2   :  { %748 = vmatmul.mubr.f32.vlgmr.msra.gmra.mxu1 %v366_v9 }
 0x282   :  { %v749_v14 = vpop.f32.mrf.mxu1 }
 0x283   :  { %v462_v15 = vadd.f32 %v749_v14, %v621_v13 }
 0x284   :  { %v456_v16 = vpop.f32.mrf.mxu1 }
 0x285   :  { %v466_v17 = vmax.f32 %v462_v15, 0.0  ;;  %v457_v18 = vadd.f32 %v621_v13, %v456_v16 }
 0x287   :  { %751 = vmatpush3.xpose.msra.mxu0 %v466_v17  ;;  %v465_v19 = vmax.f32 %v457_v18, 0.0 }
 0x288   :  { %752 = vmatprep.subr.mxu0 %v859_v10 }
 0x28b   :  { %753 = vmatpush3.xpose.msra.mxu0 %v465_v19 }
 0x28e   :  { %755 = vmatmul.mubr.f32.vlgmr.msra.gmra.mxu0 %v509_v20 }
 0x34e   :  { %v591_v26 = vpop.f32.mrf.mxu0 }
 0x34f   :  { %v592_v27 = vadd.f32 %v591_v26, %v492_v25 }
 0x350   :  { %v756_v28 = vpop.f32.mrf.mxu0 }
 0x351   :  { %596 = vst.msk [vmem:[#allocation9] sm:$0x1] %vm595_vm4, %v592_v27 }
 0x352   :  { %839 = shalt.err (!%p836_p5)
}
 0x353   :  { %606 = dma.vmem_to_hbm [thread:$0]  %s604_s15, 16, %s1069_s11, [#allocation5]  }
 0x354   :  { %852 = dma.done.wait [#allocation5], 16  }
 0x355   :  { %853 = vsyncadd [#allocation5], 4294967280 }
 0x356   :  { %610 = vsyncpa [#allocation4], 1 }
 0x357   :  { %611 = vsyncpa [#allocation7], 1 }
 0x358   :  { %612 = vsyncpa [#allocation5], 1 }

</bundles_post_ra>
